<compile_context>
chip_gen: v7x
topology: tpu7x:2x2x1
jax: 0.10.0
libtpu: 0.0.40
codegen_flags: <defaults>
</compile_context>

<pallas_src>
import jax
import jax.numpy as jnp
from jax.experimental import pallas as pl
from jax.experimental.pallas import tpu as pltpu

_SUBLANE = 8


def _ceil_to(n, m):
    return ((n + m - 1) // m) * m


def residual_block_kernel(x_ref, w1t_ref, b1_ref, w2t_ref, b2_ref, o_ref):
    # linear1 (+bias, ReLU): x @ W1^T with MXU operands in the weight compute dtype and
    # f32 accumulation.
    h = jnp.dot(x_ref[...].astype(w1t_ref.dtype), w1t_ref[...],
                preferred_element_type=jnp.float32)
    h = jnp.maximum(h + b1_ref[...], 0.0)

    # linear2: h @ W2^T.
    y = jnp.dot(h.astype(w2t_ref.dtype), w2t_ref[...],
                preferred_element_type=jnp.float32)

    # Epilogue in f32 on the VPU.  Re-read x_ref here (cheap vld, 3/cycle) instead of
    # keeping an f32 residual copy live across both matmuls.
    y = y + b2_ref[...] + x_ref[...].astype(jnp.float32)
    o_ref[...] = jnp.maximum(y, 0.0).astype(o_ref.dtype)


def prepare_residual_block_params(w1, b1, w2, b2, *, compute_dtype=jnp.bfloat16):
    """One-time parameter prep (hoist this out of the per-forward path).

    Inputs use the PyTorch nn.Linear layout: w1 [H, D_in], b1 [H], w2 [D_in, H], b2 [D_in].
    Returns (w1t [D_in, H], b1 [1, H] f32, w2t [H, D_in], b2 [1, D_in] f32) with the
    weights cast to `compute_dtype` (None -> keep original dtype) and transposed so the
    kernel can use plain [M,K]x[K,N] matmuls.
    """
    w1 = jnp.asarray(w1)
    w2 = jnp.asarray(w2)
    w_dt = w1.dtype if compute_dtype is None else compute_dtype
    w1t = w1.T.astype(w_dt)                                   # [D_in, H]
    w2t = w2.T.astype(w_dt)                                   # [H, D_in]
    b1r = jnp.asarray(b1).astype(jnp.float32).reshape(1, -1)  # [1, H]
    b2r = jnp.asarray(b2).astype(jnp.float32).reshape(1, -1)  # [1, D_in]
    return (w1t, b1r, w2t, b2r)


def _vmem_capacity_bytes():
    try:
        return int(pltpu.get_tpu_info().vmem_capacity_bytes)
    except Exception:
        return 64 * 1024 * 1024  # conservative per-core figure (v7x)


def residual_block_apply(x, params, *, tile_b=None):
    """x: [B, D_in]; params from prepare_residual_block_params(). Returns [B, D_in]."""
    w1t, b1r, w2t, b2r = params
    B, D_in = x.shape
    _, H = w1t.shape
    assert w1t.shape == (D_in, H) and w2t.shape == (H, D_in)
    assert b1r.shape == (1, H) and b2r.shape == (1, D_in)

    # Batch tile: multiple of 8 sublanes; for small batches aim for >=4 grid steps
    # (>=2 per v7x TensorCore) so BlockSpec double-buffering overlaps x/out DMA with the
    # matmuls; cap at 256 rows for large batches.
    B8 = _ceil_to(B, _SUBLANE)
    if tile_b is None:
        tile_b = min(256, max(_SUBLANE, _ceil_to(pl.cdiv(B8, 4), _SUBLANE)))
    tile_b = min(_ceil_to(tile_b, _SUBLANE), B8)
    B_pad = _ceil_to(B, tile_b)
    grid = (B_pad // tile_b,)

    # Only batch padding; feature dims are streamed at their natural width.
    x_p = x if B_pad == B else jnp.pad(x, ((0, B_pad - B), (0, 0)))

    isz = lambda a: jnp.dtype(a.dtype).itemsize
    w_bytes = w1t.size * isz(w1t) + w2t.size * isz(w2t)
    b_bytes = (b1r.size + b2r.size) * 4
    x_tile_bytes = tile_b * D_in * isz(x_p)

    # VMEM: double-buffered x/out tiles, double-buffered (constant-index, hence not
    # re-fetched) weight/bias tiles, plus f32 intermediates for h and y.
    vmem_est = (4 * x_tile_bytes
                + 2 * (w_bytes + b_bytes)
                + tile_b * H * 4 + tile_b * D_in * 4)
    vmem_limit = int(min(0.75 * _vmem_capacity_bytes(),
                         max(vmem_est + (2 << 20), 16 << 20)))

    cost = pl.CostEstimate(
        flops=4 * B_pad * D_in * H,                       # two matmuls
        transcendentals=0,
        bytes_accessed=int(2 * B_pad * D_in * isz(x_p) + w_bytes + b_bytes),
    )

    out = pl.pallas_call(
        residual_block_kernel,
        out_shape=jax.ShapeDtypeStruct((B_pad, D_in), x.dtype),
        grid_spec=pltpu.PrefetchScalarGridSpec(
            num_scalar_prefetch=0,
            grid=grid,
            in_specs=[
                pl.BlockSpec((tile_b, D_in), lambda i: (i, 0)),  # x tile (streamed)
                pl.BlockSpec((D_in, H), lambda i: (0, 0)),       # W1^T (resident)
                pl.BlockSpec((1, H), lambda i: (0, 0)),          # b1
                pl.BlockSpec((H, D_in), lambda i: (0, 0)),       # W2^T (resident)
                pl.BlockSpec((1, D_in), lambda i: (0, 0)),       # b2
            ],
            out_specs=pl.BlockSpec((tile_b, D_in), lambda i: (i, 0)),
        ),
        compiler_params=pltpu.CompilerParams(
            dimension_semantics=("parallel",),
            vmem_limit_bytes=vmem_limit,
        ),
        cost_estimate=cost,
    )(x_p, w1t, b1r, w2t, b2r)

    return out if B_pad == B else out[:B]


def residual_block(x, w1, b1, w2, b2, *, tile_b=None, compute_dtype=jnp.bfloat16):
    """Convenience path (prep + apply).  Prefer preparing params once and calling
    residual_block_apply() per forward to avoid a per-call weight HBM rewrite."""
    params = prepare_residual_block_params(w1, b1, w2, b2, compute_dtype=compute_dtype)
    return residual_block_apply(x, params, tile_b=tile_b)


def residual_block_ref(x, w1, b1, w2, b2):
    """Pure-JAX f32 reference mirroring the PyTorch forward."""
    out = jnp.maximum(x @ w1.T + b1, 0.0)
    out = out @ w2.T + b2 + x
    return jnp.maximum(out, 0.0)


if __name__ == "__main__":
    # Small shapes consistent with the module; B=50 exercises batch padding and a
    # 4-step "parallel" grid (tile_b defaults to 16 here).
    B, D_IN, HID = 50, 32, 64

    key = jax.random.PRNGKey(0)
    kx, k1, k2, k3, k4 = jax.random.split(key, 5)

    x = jax.random.normal(kx, (B, D_IN), dtype=jnp.float32)

    bound1 = 1.0 / (D_IN ** 0.5)
    bound2 = 1.0 / (HID ** 0.5)
    w1 = jax.random.uniform(k1, (HID, D_IN), minval=-bound1, maxval=bound1, dtype=jnp.float32)
    b1 = jax.random.uniform(k2, (HID,), minval=-bound1, maxval=bound1, dtype=jnp.float32)
    w2 = jax.random.uniform(k3, (D_IN, HID), minval=-bound2, maxval=bound2, dtype=jnp.float32)
    b2 = jax.random.uniform(k4, (D_IN,), minval=-bound2, maxval=bound2, dtype=jnp.float32)

    ref = residual_block_ref(x, w1, b1, w2, b2)

    # bf16 MXU operands (default): params prepared once (hoisted), loose tolerance.
    params_bf16 = prepare_residual_block_params(w1, b1, w2, b2, compute_dtype=jnp.bfloat16)
    out = jax.block_until_ready(residual_block_apply(x, params_bf16))
    assert out.shape == (B, D_IN)
    assert jnp.allclose(out, ref, atol=5e-2, rtol=5e-2), "mismatch vs f32 reference (bf16 path)"

    # Pure-f32 path: tight tolerance.
    params_f32 = prepare_residual_block_params(w1, b1, w2, b2, compute_dtype=None)
    out_f32 = jax.block_until_ready(residual_block_apply(x, params_f32))
    assert jnp.allclose(out_f32, ref, atol=1e-4, rtol=1e-4), "mismatch vs f32 reference (f32 path)"

    print("KERNEL_OK")
</pallas_src>

<mosaic_0001>
module attributes {stable_mosaic.version = 11 : i64} {
  func.func @residual_block_kernel(%arg0: i32, %arg1: memref<16x32xf32, #tpu.memory_space<vmem>>, %arg2: memref<32x64xbf16, #tpu.memory_space<vmem>>, %arg3: memref<1x64xf32, #tpu.memory_space<vmem>>, %arg4: memref<64x32xbf16, #tpu.memory_space<vmem>>, %arg5: memref<1x32xf32, #tpu.memory_space<vmem>>, %arg6: memref<16x32xf32, #tpu.memory_space<vmem>>) attributes {dimension_semantics = [#tpu.dimension_semantics<parallel>], iteration_bounds = array<i64: 4>, scalar_prefetch = 0 : i64, scratch_operands = 0 : i64, tpu.core_type = #tpu.core_type<tc>, window_params = [{transform_indices = @transform_0, window_bounds = array<i64: 16, 32>}, {pipeline_mode = #tpu.pipeline_mode<synchronous>, transform_indices = @transform_1, window_bounds = array<i64: 32, 64>}, {pipeline_mode = #tpu.pipeline_mode<synchronous>, transform_indices = @transform_2, window_bounds = array<i64: 1, 64>}, {pipeline_mode = #tpu.pipeline_mode<synchronous>, transform_indices = @transform_3, window_bounds = array<i64: 64, 32>}, {pipeline_mode = #tpu.pipeline_mode<synchronous>, transform_indices = @transform_4, window_bounds = array<i64: 1, 32>}, {transform_indices = @transform_5, window_bounds = array<i64: 16, 32>}]} {
    %c0 = arith.constant 0 : index
    %c0_0 = arith.constant 0 : index
    %0 = vector.load %arg1[%c0, %c0_0] : memref<16x32xf32, #tpu.memory_space<vmem>>, vector<16x32xf32>
    %1 = arith.truncf %0 : vector<16x32xf32> to vector<16x32xbf16>
    %c0_1 = arith.constant 0 : index
    %c0_2 = arith.constant 0 : index
    %2 = vector.load %arg2[%c0_1, %c0_2] : memref<32x64xbf16, #tpu.memory_space<vmem>>, vector<32x64xbf16>
    %cst = arith.constant dense<0.000000e+00> : vector<16x64xf32>
    %3 = tpu.matmul %1, %2, %cst {dimension_numbers = #tpu.dot_dimension_numbers<[1], [0], [0], [1], [0, 0, 1, 1], [], []>} : vector<16x32xbf16>, vector<32x64xbf16>, vector<16x64xf32> -> vector<16x64xf32>
    %c0_3 = arith.constant 0 : index
    %c0_4 = arith.constant 0 : index
    %4 = vector.load %arg3[%c0_3, %c0_4] : memref<1x64xf32, #tpu.memory_space<vmem>>, vector<1x64xf32>
    %5 = vector.broadcast %4 : vector<1x64xf32> to vector<16x64xf32>
    %6 = arith.addf %3, %5 : vector<16x64xf32>
    %cst_5 = arith.constant 0.000000e+00 : f32
    %7 = vector.broadcast %cst_5 : f32 to vector<16x64xf32>
    %8 = arith.maximumf %6, %7 : vector<16x64xf32>
    %9 = arith.truncf %8 : vector<16x64xf32> to vector<16x64xbf16>
    %c0_6 = arith.constant 0 : index
    %c0_7 = arith.constant 0 : index
    %10 = vector.load %arg4[%c0_6, %c0_7] : memref<64x32xbf16, #tpu.memory_space<vmem>>, vector<64x32xbf16>
    %cst_8 = arith.constant dense<0.000000e+00> : vector<16x32xf32>
    %11 = tpu.matmul %9, %10, %cst_8 {dimension_numbers = #tpu.dot_dimension_numbers<[1], [0], [0], [1], [0, 0, 1, 1], [], []>} : vector<16x64xbf16>, vector<64x32xbf16>, vector<16x32xf32> -> vector<16x32xf32>
    %c0_9 = arith.constant 0 : index
    %c0_10 = arith.constant 0 : index
    %12 = vector.load %arg5[%c0_9, %c0_10] : memref<1x32xf32, #tpu.memory_space<vmem>>, vector<1x32xf32>
    %13 = vector.broadcast %12 : vector<1x32xf32> to vector<16x32xf32>
    %14 = arith.addf %11, %13 : vector<16x32xf32>
    %c0_11 = arith.constant 0 : index
    %c0_12 = arith.constant 0 : index
    %15 = vector.load %arg1[%c0_11, %c0_12] : memref<16x32xf32, #tpu.memory_space<vmem>>, vector<16x32xf32>
    %16 = arith.addf %14, %15 : vector<16x32xf32>
    %cst_13 = arith.constant 0.000000e+00 : f32
    %17 = vector.broadcast %cst_13 : f32 to vector<16x32xf32>
    %18 = arith.maximumf %16, %17 : vector<16x32xf32>
    %c0_14 = arith.constant 0 : index
    %c0_15 = arith.constant 0 : index
    %19 = vector.load %arg6[%c0_14, %c0_15] : memref<16x32xf32, #tpu.memory_space<vmem>>, vector<16x32xf32>
    tpu.vector_store %arg6[%c0_14, %c0_15], %18 {strides = array<i32>} : memref<16x32xf32, #tpu.memory_space<vmem>>, vector<16x32xf32>,
    return
  }
  func.func @transform_0(%arg0: i32) -> (i32, i32) {
    %c0_i32 = arith.constant 0 : i32
    %c0_i32_0 = arith.constant 0 : i32
    return %arg0, %c0_i32 : i32, i32
  }
  func.func @transform_1(%arg0: i32) -> (i32, i32) {
    %c0_i32 = arith.constant 0 : i32
    %c0_i32_0 = arith.constant 0 : i32
    %c0_i32_1 = arith.constant 0 : i32
    return %c0_i32, %c0_i32_0 : i32, i32
  }
  func.func @transform_2(%arg0: i32) -> (i32, i32) {
    %c0_i32 = arith.constant 0 : i32
    %c0_i32_0 = arith.constant 0 : i32
    %c0_i32_1 = arith.constant 0 : i32
    return %c0_i32, %c0_i32_0 : i32, i32
  }
  func.func @transform_3(%arg0: i32) -> (i32, i32) {
    %c0_i32 = arith.constant 0 : i32
    %c0_i32_0 = arith.constant 0 : i32
    %c0_i32_1 = arith.constant 0 : i32
    return %c0_i32, %c0_i32_0 : i32, i32
  }
  func.func @transform_4(%arg0: i32) -> (i32, i32) {
    %c0_i32 = arith.constant 0 : i32
    %c0_i32_0 = arith.constant 0 : i32
    %c0_i32_1 = arith.constant 0 : i32
    return %c0_i32, %c0_i32_0 : i32, i32
  }
  func.func @transform_5(%arg0: i32) -> (i32, i32) {
    %c0_i32 = arith.constant 0 : i32
    %c0_i32_0 = arith.constant 0 : i32
    return %arg0, %c0_i32 : i32, i32
  }
}

</mosaic_0001>

<bundles_post_ra>
// kernel: tpu_custom_call.1
= control target key start
LH: loop header
LB: loop body
LE: loop exit
PB: predicated region body
PF: predicated region fallthrough
CT: control target
= control target key end

     0   :  { %s554_s18 = smov 0   ;;  %s605_s0 = inlined_call_operand.vmem [shape: f32[64,32], index: 0, kind: input, shape index: {}]   ;;  %s606_s1 = inlined_call_operand.vmem [shape: bf16[32,64], index: 1, kind: input, shape index: {}]   ;;  %s607_s2 = inlined_call_operand.vmem [shape: f32[1,64], index: 2, kind: input, shape index: {}]   ;;  %s608_s3 = inlined_call_operand.vmem [shape: bf16[64,32], index: 3, kind: input, shape index: {}]   ;;  %s609_s4 = inlined_call_operand.vmem [shape: f32[1,32], index: 4, kind: input, shape index: {}]   ;;  %s610_s5 = inlined_call_operand.vmem [shape: f32[64,32], index: 5, kind: output, shape index: {}]  }
   0x1 LB: > { %s449_s19 = sadd.s32 4294967295, %s520_s18   ;;  %p453_p0 = scmp.ge.s32.totalorder %s520_s18, 1  ;;  %s520_s18 = sphi %s554_s18, %s15_s18  }
   0x2   : > { %p188_p1 = scmp.lt.s32.totalorder %s520_s18, 5 }
   0x4   : > { %p189_p2 = pnand %p453_p0, %p188_p1 }
   0x5   : > { %v508_v0 = vld [vmem:[%s606_s1] sm:$0xff] (!%p189_p2)   ;;  %v522_v1 = vmov (!%p189_p2), 0.0   ;;  %v509_v2 = vld [vmem:[%s606_s1 + $0x8] sm:$0xff] (!%p189_p2)   ;;  %vm523_vm0 = vmmov (!%p189_p2), 0   ;;  %s454_s24 = sshll.u32 (!%p189_p2), %s449_s19, 1  ;;  %vm255_vm1 = vcmask (!%p189_p2), 261120  }
   0x6   : > { %192 = sbr.rel (%p189_p2) target bundleno = 460 (0x1cc), region = 40  ;;  %478 = vmatprep.subr.bf16.mxu0 (!%p189_p2), %v522_v1  ;;  %486 = vmatprep.subr.bf16.mxu1 (!%p189_p2), %v522_v1  ;;  %p217_p3 = scmp.lt.s32.totalorder (!%p189_p2), %s454_s24, 7  ;;  %v510_v3 = vld [vmem:[%s608_s3] sm:$0xff] (!%p189_p2)   ;;  %v511_v4 = vld [vmem:[%s608_s3 + $0x8] sm:$0xff] (!%p189_p2)   ;;  %v512_v8 = vld [vmem:[%s608_s3 + $0x10] sm:$0xff] (!%p189_p2)   ;;  %vm342_vm2 = vcmask (!%p189_p2), 523264  }
   0x7   : > { %479 = vmatpush3.bf16.msra.mxu0 (!%p189_p2), %v508_v0  ;;  %482 = vmatprep.mubr.msk.bf16.mxu0 (!%p189_p2), %vm523_vm0, %v522_v1  ;;  %v513_v9 = vld [vmem:[%s608_s3 + $0x18] sm:$0xff] (!%p189_p2)   ;;  %v458_v10 = vld [vmem:[%s607_s2] ss:$0 sm:$0xff] (!%p189_p2) }
   0x8   : > { %480 = vmatprep.subr.bf16.mxu0 (!%p189_p2), %v522_v1  ;;  %494 = vmatprep.mubr.msk.bf16.mxu1 (!%p189_p2), %vm523_vm0, %v522_v1  ;;  %v462_v20 = vld [vmem:[%s609_s4] ss:$0 sm:$0xff] (!%p189_p2) }
   0x9   : > { %487 = vmatpush3.bf16.msra.mxu1 (!%p189_p2), %v510_v3 }
   0xa   : > { %488 = vmatprep.subr.bf16.mxu1 (!%p189_p2), %v522_v1 }
   0xb   : > { %481 = vmatpush3.bf16.msra.mxu0 (!%p189_p2), %v509_v2 }
   0xd   : > { %s612_s24 = smov (!%p217_p3, %s454_s24), 7  ;;  %489 = vmatpush3.bf16.msra.mxu1 %v511_v4 }
   0xe   : > { %s455_s29 = sshll.u32 %s612_s24, 3  ;;  %490 = vmatprep.subr.bf16.mxu1 %v522_v1 }
   0xf   : > { %s220_s7 = scalar_lea.vmem %s605_s0, %s455_s29  ;;  %s226_s19 = scalar_lea.vmem %s610_s5, %s455_s29 }
  0x10   : > { %v229_v5 = vld [vmem:[%s220_s7] sm:$0xff]  ;;  %v230_v6 = vld [vmem:[%s220_s7 + $0x8] sm:$0xff] }
  0x11   : > { %v231_v7 = vpack.c.bf16 %v230_v6, %v229_v5  ;;  %491 = vmatpush3.bf16.msra.mxu1 %v512_v8 }
  0x12   : > { %492 = vmatprep.subr.bf16.mxu1 %v522_v1 }
  0x13   : > { %483 = vmatmul.mubr.msk.bf16.vlgmr.msra.gmra.mrb[0].mxu0 %vm255_vm1, %v231_v7 }
  0x15   : > { %493 = vmatpush3.bf16.msra.mxu1 %v513_v9 }
  0xe6   : > { %v293_v11 = vpop.f32.mrb[0].mxu0 }
  0xe7   : > { %v294_v12 = vadd.f32 %v458_v10, %v293_v11  ;;  %v484_v13 = vpop.f32.mrb[1].mxu0 }
  0xe8   : > { %v296_v14 = vpop.f32.mrb[2].mxu0 }
  0xe9   : > { %v297_v15 = vadd.f32 %v458_v10, %v296_v14  ;;  %v485_v16 = vpop.f32.mrb[3].mxu0  ;;  %v300_v17 = vmax.f32 %v294_v12, 0.0 }
  0xeb   : > { %v301_v18 = vmax.f32 %v297_v15, 0.0 }
  0xed   : > { %v302_v19 = vpack.c.bf16 %v301_v18, %v300_v17 }
  0xef   : > { %495 = vmatmul.mubr.msk.bf16.vlgmr.msra.gmra.mrb[0].mxu1 %vm342_vm2, %v302_v19 }
 0x1c2   : > { %v380_v21 = vpop.f32.mrb[0].mxu1 }
 0x1c3   : > { %v381_v22 = vadd.f32 %v462_v20, %v380_v21  ;;  %v496_v23 = vpop.f32.mrb[1].mxu1 }
 0x1c4   : > { %v383_v24 = vpop.f32.mrb[2].mxu1 }
 0x1c5   : > { %v387_v25 = vadd.f32 %v381_v22, %v229_v5  ;;  %v384_v26 = vadd.f32 %v462_v20, %v383_v24  ;;  %v497_v27 = vpop.f32.mrb[3].mxu1 }
 0x1c7   : > { %v389_v28 = vmax.f32 %v387_v25, 0.0  ;;  %v388_v29 = vadd.f32 %v384_v26, %v230_v6 }
 0x1c9   : > { %391 = vst.msk [vmem:[%s226_s19] sm:$0xff] %vm255_vm1, %v389_v28  ;;  %v390_v30 = vmax.f32 %v388_v29, 0.0 }
 0x1cb   : > { %392 = vst.msk [vmem:[%s226_s19 + $0x8] sm:$0xff] %vm255_vm1, %v390_v30 }
 0x1cc PF: > { %s15_s18 = sadd.s32 1, %s520_s18  }
 0x1cd   : > { %p12_p4 = scmp.ge.s32.totalorder %s15_s18, 6  }
 0x1cf   :  { %14 = sbr.rel (!%p12_p4) target bundleno = 1 (0x1), region = 70 }

</bundles_post_ra>
